<compile_context>
chip_gen: v7x
topology: tpu7x:2x2x1
jax: 0.10.0
libtpu: 0.0.40
codegen_flags: <defaults>
</compile_context>

<pallas_src>
import functools
import math

import jax
import jax.numpy as jnp
from jax.experimental import pallas as pl
from jax.experimental.pallas import tpu as pltpu


def _dw_conv1d_kernel(x_ref, w_ref, b_ref, o_ref, *, k_size, l_out):
    # x_ref: (1, tile_C, L_pad)   w_ref: (tile_C, K)   b_ref: (tile_C, 1)
    # o_ref: (1, tile_C, L_out)
    x = x_ref[0].astype(jnp.float32)            # (tile_C, L_pad)
    w = w_ref[...].astype(jnp.float32)          # (tile_C, K)
    acc = jnp.zeros((x.shape[0], l_out), jnp.float32)
    for k in range(k_size):                     # K is small & static: unrolled
        acc = acc + w[:, k:k + 1] * x[:, k:k + l_out]
    acc = acc + b_ref[...].astype(jnp.float32)  # (tile_C, 1) broadcasts over L
    o_ref[0] = acc.astype(o_ref.dtype)


def _pick_tile_c(c, max_tile=256):
    """Largest multiple-of-8 divisor of c that is <= max_tile; else c itself."""
    if c <= max_tile:
        return c
    best = c
    for t in range(8, max_tile + 1, 8):
        if c % t == 0:
            best = t
    return best


def depthwise_conv1d(x, weight, bias, padding, *, max_tile_c=256):
    """Depthwise 1-D convolution.

    x:       (B, C_in, L)
    weight:  (C_out, 1, K)  -- PyTorch Conv1d layout with groups=C_in
    bias:    (C_out,) or None
    padding: (pad_left, pad_right) applied to the last dim (F.pad semantics)
    """
    b_, c_in, l_in = x.shape
    c_out, _, k = weight.shape
    assert c_out % c_in == 0, "groups=chan_in requires chan_out % chan_in == 0"
    mult = c_out // c_in
    if mult > 1:
        # channel multiplier: output channel o reads input channel o // mult
        x = jnp.repeat(x, mult, axis=1)

    pad_l, pad_r = int(padding[0]), int(padding[1])
    x_pad = jnp.pad(x, ((0, 0), (0, 0), (pad_l, pad_r)))
    l_pad = l_in + pad_l + pad_r
    l_out = l_pad - k + 1
    assert l_out > 0

    w2d = weight.reshape(c_out, k).astype(jnp.float32)
    if bias is None:
        bias = jnp.zeros((c_out,), jnp.float32)
    b2d = bias.reshape(c_out, 1).astype(jnp.float32)

    tile_c = _pick_tile_c(c_out, max_tile_c)
    grid = (b_, c_out // tile_c)

    kernel = functools.partial(_dw_conv1d_kernel, k_size=k, l_out=l_out)
    return pl.pallas_call(
        kernel,
        out_shape=jax.ShapeDtypeStruct((b_, c_out, l_out), x.dtype),
        grid_spec=pltpu.PrefetchScalarGridSpec(
            num_scalar_prefetch=0,
            grid=grid,
            in_specs=[
                pl.BlockSpec((1, tile_c, l_pad), lambda bi, ci: (bi, ci, 0)),
                pl.BlockSpec((tile_c, k), lambda bi, ci: (ci, 0)),
                pl.BlockSpec((tile_c, 1), lambda bi, ci: (ci, 0)),
            ],
            out_specs=pl.BlockSpec((1, tile_c, l_out), lambda bi, ci: (bi, ci, 0)),
        ),
        compiler_params=pltpu.CompilerParams(
            dimension_semantics=("parallel", "parallel"),
        ),
    )(x_pad, w2d, b2d)


def _depthwise_conv1d_ref(x, weight, bias, padding):
    """Pure-JAX reference matching PyTorch F.pad + Conv1d(groups=chan_in)."""
    xp = jnp.pad(x, ((0, 0), (0, 0), (int(padding[0]), int(padding[1]))))
    out = jax.lax.conv_general_dilated(
        xp.astype(jnp.float32),
        weight.astype(jnp.float32),
        window_strides=(1,),
        padding="VALID",
        dimension_numbers=("NCH", "OIH", "NCH"),
        feature_group_count=x.shape[1],
    )
    out = out + bias.astype(jnp.float32)[None, :, None]
    return out.astype(x.dtype)


if __name__ == "__main__":
    key = jax.random.PRNGKey(0)
    B, C, L, K = 2, 16, 64, 3
    padding = (K - 1, 0)  # causal-style padding, as typically used with this module

    kx, kw, kb = jax.random.split(key, 3)
    x = jax.random.normal(kx, (B, C, L), dtype=jnp.float32)
    bound = 1.0 / math.sqrt(K)  # Conv1d default init bound (fan_in = 1 * K)
    weight = jax.random.uniform(kw, (C, 1, K), dtype=jnp.float32,
                                minval=-bound, maxval=bound)
    bias = jax.random.uniform(kb, (C,), dtype=jnp.float32,
                              minval=-bound, maxval=bound)

    y = depthwise_conv1d(x, weight, bias, padding)
    y = jax.block_until_ready(y)

    y_ref = _depthwise_conv1d_ref(x, weight, bias, padding)
    assert y.shape == y_ref.shape == (B, C, L)
    assert jnp.allclose(y, y_ref, atol=1e-5, rtol=1e-5)
    print("KERNEL_OK")
</pallas_src>

<mosaic_0001>
module attributes {stable_mosaic.version = 11 : i64} {
  func.func @_dw_conv1d_kernel(%arg0: i32, %arg1: i32, %arg2: memref<1x16x66xf32, #tpu.memory_space<vmem>>, %arg3: memref<16x3xf32, #tpu.memory_space<vmem>>, %arg4: memref<16x1xf32, #tpu.memory_space<vmem>>, %arg5: memref<1x16x64xf32, #tpu.memory_space<vmem>>) attributes {dimension_semantics = [#tpu.dimension_semantics<parallel>, #tpu.dimension_semantics<parallel>], iteration_bounds = array<i64: 2, 1>, scalar_prefetch = 0 : i64, scratch_operands = 0 : i64, tpu.core_type = #tpu.core_type<tc>, window_params = [{transform_indices = @transform_0, window_bounds = array<i64: 1, 16, 66>}, {transform_indices = @transform_1, window_bounds = array<i64: 16, 3>}, {transform_indices = @transform_2, window_bounds = array<i64: 16, 1>}, {transform_indices = @transform_3, window_bounds = array<i64: 1, 16, 64>}]} {
    %c0 = arith.constant 0 : index
    %c0_0 = arith.constant 0 : index
    %c0_1 = arith.constant 0 : index
    %0 = vector.load %arg2[%c0, %c0_0, %c0_1] : memref<1x16x66xf32, #tpu.memory_space<vmem>>, vector<1x16x66xf32>
    %1 = vector.shape_cast %0 : vector<1x16x66xf32> to vector<16x66xf32>
    %c0_2 = arith.constant 0 : index
    %c0_3 = arith.constant 0 : index
    %2 = vector.load %arg3[%c0_2, %c0_3] : memref<16x3xf32, #tpu.memory_space<vmem>>, vector<16x3xf32>
    %cst = arith.constant 0.000000e+00 : f32
    %3 = vector.broadcast %cst : f32 to vector<16x64xf32>
    %4 = vector.extract_strided_slice %2 {offsets = [0, 0], sizes = [16, 1], strides = [1, 1]} : vector<16x3xf32> to vector<16x1xf32>
    %5 = vector.extract_strided_slice %1 {offsets = [0, 0], sizes = [16, 64], strides = [1, 1]} : vector<16x66xf32> to vector<16x64xf32>
    %6 = vector.broadcast %4 : vector<16x1xf32> to vector<16x64xf32>
    %7 = arith.mulf %6, %5 : vector<16x64xf32>
    %8 = arith.addf %3, %7 : vector<16x64xf32>
    %9 = vector.extract_strided_slice %2 {offsets = [0, 1], sizes = [16, 1], strides = [1, 1]} : vector<16x3xf32> to vector<16x1xf32>
    %10 = vector.extract_strided_slice %1 {offsets = [0, 1], sizes = [16, 64], strides = [1, 1]} : vector<16x66xf32> to vector<16x64xf32>
    %11 = vector.broadcast %9 : vector<16x1xf32> to vector<16x64xf32>
    %12 = arith.mulf %11, %10 : vector<16x64xf32>
    %13 = arith.addf %8, %12 : vector<16x64xf32>
    %14 = vector.extract_strided_slice %2 {offsets = [0, 2], sizes = [16, 1], strides = [1, 1]} : vector<16x3xf32> to vector<16x1xf32>
    %15 = vector.extract_strided_slice %1 {offsets = [0, 2], sizes = [16, 64], strides = [1, 1]} : vector<16x66xf32> to vector<16x64xf32>
    %16 = vector.broadcast %14 : vector<16x1xf32> to vector<16x64xf32>
    %17 = arith.mulf %16, %15 : vector<16x64xf32>
    %18 = arith.addf %13, %17 : vector<16x64xf32>
    %c0_4 = arith.constant 0 : index
    %c0_5 = arith.constant 0 : index
    %19 = vector.load %arg4[%c0_4, %c0_5] : memref<16x1xf32, #tpu.memory_space<vmem>>, vector<16x1xf32>
    %20 = vector.broadcast %19 : vector<16x1xf32> to vector<16x64xf32>
    %21 = arith.addf %18, %20 : vector<16x64xf32>
    %c0_6 = arith.constant 0 : index
    %c0_7 = arith.constant 0 : index
    %c0_8 = arith.constant 0 : index
    %22 = vector.load %arg5[%c0_6, %c0_7, %c0_8] : memref<1x16x64xf32, #tpu.memory_space<vmem>>, vector<1x16x64xf32>
    %23 = vector.shape_cast %22 : vector<1x16x64xf32> to vector<16x64xf32>
    %24 = vector.shape_cast %21 : vector<16x64xf32> to vector<1x16x64xf32>
    tpu.vector_store %arg5[%c0_6, %c0_7, %c0_8], %24 {strides = array<i32>} : memref<1x16x64xf32, #tpu.memory_space<vmem>>, vector<1x16x64xf32>,
    return
  }
  func.func @transform_0(%arg0: i32, %arg1: i32) -> (i32, i32, i32) {
    %c0_i32 = arith.constant 0 : i32
    %c0_i32_0 = arith.constant 0 : i32
    return %arg0, %arg1, %c0_i32 : i32, i32, i32
  }
  func.func @transform_1(%arg0: i32, %arg1: i32) -> (i32, i32) {
    %c0_i32 = arith.constant 0 : i32
    %c0_i32_0 = arith.constant 0 : i32
    return %arg1, %c0_i32 : i32, i32
  }
  func.func @transform_2(%arg0: i32, %arg1: i32) -> (i32, i32) {
    %c0_i32 = arith.constant 0 : i32
    %c0_i32_0 = arith.constant 0 : i32
    return %arg1, %c0_i32 : i32, i32
  }
  func.func @transform_3(%arg0: i32, %arg1: i32) -> (i32, i32, i32) {
    %c0_i32 = arith.constant 0 : i32
    %c0_i32_0 = arith.constant 0 : i32
    return %arg0, %arg1, %c0_i32 : i32, i32, i32
  }
}

</mosaic_0001>

<bundles_post_ra>
// kernel: tpu_custom_call.1
= control target key start
LH: loop header
LB: loop body
LE: loop exit
PB: predicated region body
PF: predicated region fallthrough
CT: control target
= control target key end

     0   :  { %8 = vsyncpa [#allocation3], 0  ;;  %s762_s0 = inlined_call_operand.vmem [shape: f32[2,16,66], index: 0, kind: input, shape index: {}]   ;;  %s763_s1 = inlined_call_operand.vmem [shape: f32[16,3], index: 1, kind: input, shape index: {}]   ;;  %s764_s2 = inlined_call_operand.vmem [shape: f32[16,1], index: 2, kind: input, shape index: {}]   ;;  %s765_s3 = inlined_call_operand.hbm [shape: f32[2,16,64], index: 3, kind: output, shape index: {}]  }
   0x1   :  { %10 = vsyncpa [#allocation3 + $0x1], 0  ;;  %s635_s12 = smov 0   ;;  %s637_s13 = smov 0  }
   0x2   :  { %s639_s14 = smov 0   ;;  %s641_s15 = smov 0  }
   0x3   :  { %s643_s16 = smov 0   ;;  %s645_s17 = smov 0  }
   0x4 LB: > { %s444_s18 = sadd.s32 4294967295, %s605_s17   ;;  %s445_s19 = sadd.s32 4294967294, %s605_s17   ;;  %s605_s17 = sphi %s645_s17, %s16_s17   ;;  %s601_s16 = sphi %s643_s16, %s772_s16   ;;  %s597_s15 = sphi %s641_s15, %s771_s15   ;;  %s593_s14 = sphi %s639_s14, %s770_s14   ;;  %s589_s13 = sphi %s637_s13, %s769_s13   ;;  %s585_s12 = sphi %s635_s12, %s768_s12  }
   0x5   : > { %s28_s20 = sadd.s32 1, %s601_s16  ;;  %s117_s21 = sadd.s32 1, %s593_s14 }
   0x6   : > { %p30_p0 = scmp.ge.s32.totalorder %s28_s20, 2  ;;  %p127_p1 = scmp.ne.s32.totalorder %s593_s14, %s589_s13 }
   0x7   : > { %p128_p2 = scmp.eq.s32.totalorder %s444_s18, 1  ;;  %p133_p3 = scmp.ne.s32.totalorder %s589_s13, %s585_s12 }
   0x8   : > { %s774_s20 = smov (%p30_p0, %s28_s20), 0  ;;  %p134_p5 = scmp.eq.s32.totalorder %s445_s19, 1 }
   0x9   : > { %p675_p4 = por %p128_p2, %p127_p1  ;;  %s112_s23 = ssub.s32 %s601_s16, %s774_s20 }
   0xa   : > { %p450_p6 = scmp.ge.s32.totalorder %s605_s17, 1  ;;  %p115_p7 = scmp.eq.s32.totalorder %s112_s23, 0 }
   0xb   : > { %p682_p8 = por %p134_p5, %p133_p3  ;;  %p183_p9 = scmp.lt.s32.totalorder %s605_s17, 3 }
   0xc   : > { %s688_s25 = scalar_select %p115_p7, %s593_s14, %s117_s21  }
   0xd   : > { %p184_p10 = pnand %p450_p6, %p183_p9 }
   0xe   : > { %v246_v0 = vld [vmem:[%s763_s1] sm:$0xff] (!%p184_p10)  ;;  %v607_v1 = vmov (!%p184_p10), 2   ;;  %v608_v2 = vmov (!%p184_p10), 1   ;;  %v247_v3 = vld [vmem:[%s763_s1 + $0x8] sm:$0xff] (!%p184_p10)  ;;  %v609_v4 = vmov (!%p184_p10), 0   ;;  %p222_p11 = scmp.lt.s32.totalorder (!%p184_p10), %s597_s15, 1 }
   0xf   : > { %187 = sbr.rel (%p184_p10) target bundleno = 288 (0x120), region = 32  ;;  %524 = vset.pattern.permute.xlu1 (!%p184_p10), %v607_v1  ;;  %523 = vset.pattern.permute.xlu0 (!%p184_p10), %v608_v2  ;;  %v302_v5 = vld [vmem:[%s764_s2] sm:$0xff] (!%p184_p10)  ;;  %v303_v6 = vld [vmem:[%s764_s2 + $0x8] sm:$0xff] (!%p184_p10)  ;;  %s610_s18 = smov (!%p184_p10), 127   ;;  %vm316_vm0 = vcmask (!%p184_p10), 523264  }
  0x10   : > { %283 = vperm.xlu1 (!%p184_p10), %524, %v246_v0   ;;  %263 = vperm.xlu0 (!%p184_p10), %523, %v246_v0   ;;  %s611_s19 = smov (!%p184_p10), 126   ;;  %s218_s21 = sand.u32 (!%p184_p10), 1, %s589_s13  }
  0x11   : > { %s451_s23 = sshll.u32 (!%p184_p10), %s218_s21, 4  ;;  %s460_s28 = sshll.u32 (!%p184_p10), %s597_s15, 8 }
  0x12   : > { %s220_s26 = scalar_lea.vmem (!%p184_p10), [#allocation2], %s451_s23  ;;  %s712_s4 = scalar_lea.hbm (!%p184_p10), %s765_s3, %s460_s28 }
  0x13   : > { %s335_s27 = sshll.u32 (!%p184_p10), %s220_s26, 4  ;;  %s716_s5 = scalar_lea.sflag (!%p184_p10), [#allocation3], %s218_s21  ;;  %s714_s27 = int_to_ptr.vmem [resolvable:$true] %s335_s27 }
  0x14   : > { %287 = vperm.xlu1 (!%p184_p10), %524, %v247_v3   ;;  %267 = vperm.xlu0 (!%p184_p10), %523, %v247_v3   ;;  %s527_s6 = scalar_lea.vmem (!%p184_p10), %s714_s27, 256 }
  0x15   : > { %p528_p12 = scmp.ne.s32.totalorder (!%p184_p10), %s714_s27, %s527_s6 }
  0x16   : > { %s223_s7 = scalar_select %p222_p11, %s597_s15, 1 }
  0x17   : > { %p529_p13 = pnand %p528_p12, %p675_p4  ;;  %s612_s15 = smov [#allocation2]  }
  0x18   : > { %526 = vset.pattern.permute.xlu1 %v609_v4  ;;  %525 = vset.pattern.permute.xlu0 %v609_v4  ;;  %s459_s8 = sshll.u32 %s223_s7, 4  ;;  %s531_s7 = sshll.u32 %s612_s15, 4  ;;  %s532_s7 = int_to_ptr.vmem [resolvable:$false] %s531_s7 }
  0x19   : > { %255 = vperm.xlu1 %526, %v247_v3   ;;  %250 = vperm.xlu0 %525, %v246_v0   ;;  %s229_s11 = scalar_lea.vmem %s762_s0, %s459_s8  ;;  %p530_p0 = pneg %p529_p13 }
  0x1a   : > { %v244_v7 = vld [vmem:[%s229_s11] sm:$0xff]  ;;  %v245_v11 = vld [vmem:[%s229_s11 + $0x8] sm:$0xff]  ;;  %s533_s8 = scalar_lea.vmem %s532_s7, 512  ;;  %p534_p1 = scmp.lt.s32.totalorder %s714_s27, %s532_s7 }
  0x1b   : > { %p535_p2 = scmp.lt.s32.totalorder %s533_s8, %s527_s6 }
  0x1d   : > { %306 = vperm.xlu1 %526, %v302_v5   ;;  %311 = vperm.xlu0 %525, %v303_v6   ;;  %p536_p3 = por %p535_p2, %p534_p1 }
  0x1f   : > { %p537_p5 = pnand %p536_p3, %p530_p0 }
  0x8f   : > { %v284_v8 = vpop.permute.xlu1 %283  ;;  %v264_v9 = vpop.permute.xlu0 %263 }
  0x90   : > { %v270_v10 = vmul.f32 %v264_v9, %v244_v7  ;;  %v290_v12 = vmul.f32 %v284_v8, %v244_v7 }
  0x92   : > { %274 = vrot.lane.b32.xlu1 %v270_v10, %s610_s18 }
  0x93   : > { %v268_v13 = vpop.permute.xlu0 %267  ;;  %v288_v15 = vpop.permute.xlu1 %287 }
  0x94   : > { %v271_v14 = vmul.f32 %v268_v13, %v245_v11  ;;  %v291_v16 = vmul.f32 %v288_v15, %v245_v11 }
  0x96   : > { %276 = vrot.lane.b32.xlu0 %v271_v14, %s610_s18  ;;  %294 = vrot.lane.b32.xlu1 %v290_v12, %s611_s19 }
  0x98   : > { %v256_v17 = vpop.permute.xlu1 %255  ;;  %v251_v18 = vpop.permute.xlu0 %250 }
  0x99   : > { %v258_v22 = vmul.f32 %v251_v18, %v244_v7  ;;  %v259_v26 = vmul.f32 %v256_v17, %v245_v11 }
  0x9a   : > { %296 = vrot.lane.b32.xlu0 %v291_v16, %s611_s19 }
  0x9c   : > { %v307_v19 = vpop.permute.xlu1 %306  ;;  %v312_v20 = vpop.permute.xlu0 %311 }
 0x104   : > { %v275_v21 = vpop.permute.xlu1 %274 }
 0x105   : > { %v280_v23 = vadd.f32 %v275_v21, %v258_v22 }
 0x108   : > { %v277_v24 = vpop.permute.xlu0 %276  ;;  %v295_v25 = vpop.permute.xlu1 %294 }
 0x109   : > { %v300_v27 = vadd.f32 %v295_v25, %v280_v23  ;;  %v281_v28 = vadd.f32 %v277_v24, %v259_v26 }
 0x10b   : > { %v314_v29 = vadd.f32 %v307_v19, %v300_v27 }
 0x10c   : > { %v297_v30 = vpop.permute.xlu0 %296 }
 0x10d   : > { %317 = vst.msk [vmem:[%s220_s26] sm:$0xff] %vm316_vm0, %v314_v29  ;;  %v301_v31 = vadd.f32 %v297_v30, %v281_v28 }
 0x10f   : > { %v315_v32 = vadd.f32 %v312_v20, %v301_v31 }
 0x111   : > { %318 = vst.msk [vmem:[%s220_s26 + $0x8] sm:$0xff] %vm316_vm0, %v315_v32 }
 0x112   : > { %540 = shalt.err (!%p537_p5)
}
 0x113   : > { %s541_s9 = scalar_lea.hbm %s712_s4, 256  ;;  %s545_s18 = scalar_lea.hbm %s765_s3, 512 }
 0x114   : > { %p542_p6 = scmp.ne.s32.totalorder %s712_s4, %s541_s9  ;;  %p546_p10 = scmp.lt.u32.totalorder %s712_s4, %s765_s3 }
 0x115   : > { %p547_p11 = scmp.lt.u32.totalorder %s545_s18, %s541_s9  ;;  %p549_p13 = scmp.lt.u32.totalorder %s541_s9, %s712_s4 }
 0x116   : > { %p543_p7 = pnand %p542_p6, %p675_p4 }
 0x117   : > { %p548_p12 = por %p547_p11, %p546_p10 }
 0x118   : > { %p544_p9 = pneg %p543_p7 }
 0x119   : > { %p550_p0 = por %p549_p13, %p548_p12 }
 0x11b   : > { %p551_p1 = pnand %p550_p0, %p544_p9 }
 0x11d   : > { %554 = shalt.err (!%p551_p1)
}
 0x11e   : > { %s613_s23 = smov 128   ;;  %s614_s26 = smov 8  }
 0x11f   : > { %461 = dma.vmem_to_hbm [thread:$0]  (%p675_p4), %s714_s27, 256, %s712_s4, %s716_s5, %s613_s23, %s613_s23, %s614_s26  }
 0x120 PF: > { %p467_p2 = scmp.ge.s32.totalorder %s605_s17, 2  ;;  %s350_s28 = sand.u32 1, %s585_s12  }
 0x121   : > { %s351_s29 = scalar_lea.sflag [#allocation3], %s350_s28 }
 0x122   : > { %p464_p3 = pnand %p467_p2, %p682_p8 }
 0x124   : > { %580 = dma.done.wait (!%p464_p3), %s351_s29, 256  }
 0x125   : > { %582 = vsyncadd (!%p464_p3), %s351_s29, 4294967040  ;;  %s16_s17 = sadd.s32 1, %s605_s17   ;;  %s768_s12 = smov %s589_s13 }
 0x126   : > { %p13_p5 = scmp.ge.s32.totalorder %s16_s17, 4   ;;  %s769_s13 = smov %s593_s14 }
 0x127   : > { %s770_s14 = smov %s688_s25  ;;  %s771_s15 = smov %s601_s16 }
 0x128   : > { %s772_s16 = smov %s774_s20  ;;  %15 = sbr.rel (!%p13_p5) target bundleno = 4 (0x4), region = 73 }
 0x12f   :  { %356 = vsyncpa [#allocation3], 1 }
 0x130   :  { %358 = vsyncpa [#allocation3 + $0x1], 1 }

</bundles_post_ra>
